<compile_context>
chip_gen: v5e
topology: v5e:2x2
jax: 0.10.0
libtpu: 0.0.40
codegen_flags: <defaults>
</compile_context>

<pallas_src>
import functools
from typing import NamedTuple

import jax
import jax.numpy as jnp
from jax.experimental import pallas as pl
from jax.experimental.pallas import tpu as pltpu


GATE_ORDER = ("forget", "input", "output", "cell")


def _round_up(x, m):
    return ((x + m - 1) // m) * m


def _compiler_params(dimension_semantics, resident_bytes):
    kwargs = dict(dimension_semantics=dimension_semantics)
    # Defaults: 16 MiB scoped VMEM on v5e, 32 MiB on v6e/v7x; v7x physical is 64 MiB.
    if resident_bytes > 12 * 2**20:
        kwargs["vmem_limit_bytes"] = int(
            min(max(2 * resident_bytes, 32 * 2**20), 64 * 2**20))
    return pltpu.CompilerParams(**kwargs)


# ----------------------------------------------------------------------------
# Pre-fused parameter containers (built once, reused across steps).
# ----------------------------------------------------------------------------
class FusedStepParams(NamedTuple):
    w: jax.Array        # (Kp, 4*Hp), compute dtype; bias folded as an extra row
    k_valid: int        # sum(D_i) + H + 1 (used rows; rest is zero padding)
    hidden: int
    hidden_pad: int


class FusedSeqParams(NamedTuple):
    wx: jax.Array       # (Kxp, 4*Hp) input projection (+ bias row), compute dtype
    wh: jax.Array       # (Hp, 4*Hp) recurrent projection, compute dtype
    kx_valid: int       # sum(D_i) + 1
    hidden: int
    hidden_pad: int


def fuse_step_params(gate_weights, gate_biases, hidden_size,
                     *, compute_dtype=jnp.bfloat16):
    """Fuse all gate weights + biases into one lane-aligned (Kp, 4*Hp) matrix."""
    H = hidden_size
    Hp = _round_up(H, 128)
    cols = []
    for g in GATE_ORDER:
        w = jnp.concatenate(list(gate_weights[g]), axis=0)           # (sumD + H, H)
        w = jnp.concatenate([w, gate_biases[g][None, :]], axis=0)    # + bias row
        cols.append(jnp.pad(w, ((0, 0), (0, Hp - H))))
    w_all = jnp.concatenate(cols, axis=1)                            # (K, 4*Hp)
    K = w_all.shape[0]
    Kp = _round_up(K, 128)
    w_all = jnp.pad(w_all, ((0, Kp - K), (0, 0))).astype(compute_dtype)
    return FusedStepParams(w=w_all, k_valid=K, hidden=H, hidden_pad=Hp)


def fuse_seq_params(gate_weights, gate_biases, hidden_size,
                    *, compute_dtype=jnp.bfloat16):
    """Fuse weights for the sequence kernel: x-projection and h-projection split."""
    H = hidden_size
    Hp = _round_up(H, 128)
    wx_cols, wh_cols = [], []
    for g in GATE_ORDER:
        ws = list(gate_weights[g])
        wx = jnp.concatenate(ws[:-1], axis=0)                        # (sumD, H)
        wx = jnp.concatenate([wx, gate_biases[g][None, :]], axis=0)  # + bias row
        wx_cols.append(jnp.pad(wx, ((0, 0), (0, Hp - H))))
        wh_cols.append(jnp.pad(ws[-1], ((0, Hp - H), (0, Hp - H))))  # (Hp, Hp)
    wx_all = jnp.concatenate(wx_cols, axis=1)                        # (Kx, 4*Hp)
    Kx = wx_all.shape[0]
    Kxp = _round_up(Kx, 128)
    wx_all = jnp.pad(wx_all, ((0, Kxp - Kx), (0, 0))).astype(compute_dtype)
    wh_all = jnp.concatenate(wh_cols, axis=1).astype(compute_dtype)  # (Hp, 4*Hp)
    return FusedSeqParams(wx=wx_all, wh=wh_all, kx_valid=Kx,
                          hidden=H, hidden_pad=Hp)


# ----------------------------------------------------------------------------
# Single-step kernel (matches LSTM.forward).
# ----------------------------------------------------------------------------
def _lstm_step_kernel(x_ref, w_ref, c_ref, h_out_ref, c_out_ref, *, hidden_pad):
    Hp = hidden_pad
    # One fused MXU matmul for all 4 gates (bias folded in): (TB,Kp)@(Kp,4Hp).
    z = jnp.dot(x_ref[...], w_ref[...], preferred_element_type=jnp.float32)
    f = jax.nn.sigmoid(z[:, 0 * Hp:1 * Hp])     # forget
    i = jax.nn.sigmoid(z[:, 1 * Hp:2 * Hp])     # input
    o = jax.nn.sigmoid(z[:, 2 * Hp:3 * Hp])     # output
    g = jnp.tanh(z[:, 3 * Hp:4 * Hp])           # cell input
    c_new = f * c_ref[...] + i * g
    h_out_ref[...] = o * jnp.tanh(c_new)
    c_out_ref[...] = c_new


def lstm_step(hidden_h, hidden_c, inputs, fused: FusedStepParams):
    """One LSTM step: returns (out_h, out_c), each (B, H) float32."""
    B, H = hidden_h.shape
    assert H == fused.hidden
    Hp = fused.hidden_pad
    K, Kp = fused.k_valid, fused.w.shape[0]
    compute_dtype = fused.w.dtype

    TB = min(_round_up(max(B, 1), 8), 256)      # batch tile (sublane-aligned)
    Bp = _round_up(B, TB)
    nb = Bp // TB

    ones = jnp.ones((B, 1), jnp.float32)        # constant-1 column -> bias
    x = jnp.concatenate([a.astype(jnp.float32) for a in inputs]
                        + [hidden_h.astype(jnp.float32), ones], axis=-1)
    x = jnp.pad(x, ((0, Bp - B), (0, Kp - K))).astype(compute_dtype)
    c = jnp.pad(hidden_c.astype(jnp.float32), ((0, Bp - B), (0, Hp - H)))

    itemsize = jnp.dtype(compute_dtype).itemsize
    resident = (Kp * 4 * Hp * itemsize          # resident fused weight
                + 2 * TB * Kp * itemsize        # double-buffered x tiles
                + 2 * TB * Hp * 4               # double-buffered c tiles
                + 4 * TB * Hp * 4               # double-buffered outputs
                + TB * 4 * Hp * 4)              # z / gate temporaries

    kernel = functools.partial(_lstm_step_kernel, hidden_pad=Hp)
    out_h, out_c = pl.pallas_call(
        kernel,
        out_shape=(jax.ShapeDtypeStruct((Bp, Hp), jnp.float32),
                   jax.ShapeDtypeStruct((Bp, Hp), jnp.float32)),
        grid=(nb,),
        in_specs=[
            pl.BlockSpec((TB, Kp), lambda i: (i, 0)),
            pl.BlockSpec((Kp, 4 * Hp), lambda i: (0, 0)),   # weight stays resident
            pl.BlockSpec((TB, Hp), lambda i: (i, 0)),
        ],
        out_specs=(pl.BlockSpec((TB, Hp), lambda i: (i, 0)),
                   pl.BlockSpec((TB, Hp), lambda i: (i, 0))),
        compiler_params=_compiler_params(("parallel",), resident),
    )(x, fused.w, c)
    return out_h[:B, :H], out_c[:B, :H]


# ----------------------------------------------------------------------------
# Fused-sequence kernel: whole recurrence in one pallas_call, h/c in VMEM scratch.
# ----------------------------------------------------------------------------
def _lstm_seq_kernel(x_ref, wx_ref, wh_ref, h0_ref, c0_ref,
                     hseq_ref, c_out_ref, h_scr, c_scr,
                     *, hidden_pad, compute_dtype):
    Hp = hidden_pad
    t = pl.program_id(1)

    @pl.when(t == 0)
    def _init():
        h_scr[...] = h0_ref[...]
        c_scr[...] = c0_ref[...]

    z = jnp.dot(x_ref[0], wx_ref[...], preferred_element_type=jnp.float32)
    z = z + jnp.dot(h_scr[...].astype(compute_dtype), wh_ref[...],
                    preferred_element_type=jnp.float32)

    f = jax.nn.sigmoid(z[:, 0 * Hp:1 * Hp])
    i = jax.nn.sigmoid(z[:, 1 * Hp:2 * Hp])
    o = jax.nn.sigmoid(z[:, 2 * Hp:3 * Hp])
    g = jnp.tanh(z[:, 3 * Hp:4 * Hp])

    c_new = f * c_scr[...] + i * g
    h_new = o * jnp.tanh(c_new)
    c_scr[...] = c_new
    h_scr[...] = h_new
    hseq_ref[0] = h_new

    @pl.when(t == pl.num_programs(1) - 1)
    def _finalize():
        c_out_ref[...] = c_new


def lstm_sequence(hidden_h, hidden_c, inputs_seq, fused: FusedSeqParams):
    """Run T LSTM steps fused in one kernel.

    inputs_seq: tuple of (T, B, D_i) arrays. Returns (h_seq (T,B,H), c_final (B,H)).
    """
    T = inputs_seq[0].shape[0]
    B, H = hidden_h.shape
    assert H == fused.hidden
    Hp = fused.hidden_pad
    Kx, Kxp = fused.kx_valid, fused.wx.shape[0]
    compute_dtype = fused.wx.dtype

    TB = min(_round_up(max(B, 1), 8), 256)
    Bp = _round_up(B, TB)
    nb = Bp // TB

    ones = jnp.ones((T, B, 1), jnp.float32)
    x = jnp.concatenate([a.astype(jnp.float32) for a in inputs_seq] + [ones],
                        axis=-1)                                      # (T, B, Kx)
    x = jnp.pad(x, ((0, 0), (0, Bp - B), (0, Kxp - Kx))).astype(compute_dtype)
    h0 = jnp.pad(hidden_h.astype(jnp.float32), ((0, Bp - B), (0, Hp - H)))
    c0 = jnp.pad(hidden_c.astype(jnp.float32), ((0, Bp - B), (0, Hp - H)))

    itemsize = jnp.dtype(compute_dtype).itemsize
    resident = ((Kxp + Hp) * 4 * Hp * itemsize   # resident wx + wh
                + 2 * TB * Kxp * itemsize        # double-buffered x_t
                + 4 * TB * Hp * 4                # h0/c0 blocks
                + 4 * TB * Hp * 4                # hseq / c output buffers
                + 2 * TB * Hp * 4                # h/c scratch
                + TB * 4 * Hp * 4)               # z temporaries

    kernel = functools.partial(_lstm_seq_kernel, hidden_pad=Hp,
                               compute_dtype=compute_dtype)
    h_seq, c_T = pl.pallas_call(
        kernel,
        out_shape=(jax.ShapeDtypeStruct((T, Bp, Hp), jnp.float32),
                   jax.ShapeDtypeStruct((Bp, Hp), jnp.float32)),
        grid=(nb, T),
        in_specs=[
            pl.BlockSpec((1, TB, Kxp), lambda b, t: (t, b, 0)),   # stream x_t
            pl.BlockSpec((Kxp, 4 * Hp), lambda b, t: (0, 0)),     # wx resident
            pl.BlockSpec((Hp, 4 * Hp), lambda b, t: (0, 0)),      # wh resident
            pl.BlockSpec((TB, Hp), lambda b, t: (b, 0)),          # h0
            pl.BlockSpec((TB, Hp), lambda b, t: (b, 0)),          # c0
        ],
        out_specs=(pl.BlockSpec((1, TB, Hp), lambda b, t: (t, b, 0)),
                   pl.BlockSpec((TB, Hp), lambda b, t: (b, 0))),
        scratch_shapes=[pltpu.VMEM((TB, Hp), jnp.float32),        # h state
                        pltpu.VMEM((TB, Hp), jnp.float32)],       # c state
        compiler_params=_compiler_params(("parallel", "arbitrary"), resident),
    )(x, fused.wx, fused.wh, h0, c0)
    return h_seq[:, :B, :H], c_T[:B, :H]


# ----------------------------------------------------------------------------
# Pure-JAX references (match PyTorch module semantics) + synthetic init.
# ----------------------------------------------------------------------------
def _reference_step(hidden_h, hidden_c, inputs, gate_weights, gate_biases):
    def gate(name, act):
        xs = list(inputs) + [hidden_h]
        s = sum(jnp.dot(x, W, precision=jax.lax.Precision.HIGHEST)
                for x, W in zip(xs, gate_weights[name])) + gate_biases[name]
        return act(s)

    f = gate("forget", jax.nn.sigmoid)
    i = gate("input", jax.nn.sigmoid)
    o = gate("output", jax.nn.sigmoid)
    g = gate("cell", jnp.tanh)
    out_c = f * hidden_c + i * g
    out_h = o * jnp.tanh(out_c)
    return out_h, out_c


def _reference_seq(h0, c0, inputs_seq, gate_weights, gate_biases):
    def step(carry, xs):
        h, c = carry
        h2, c2 = _reference_step(h, c, xs, gate_weights, gate_biases)
        return (h2, c2), h2
    (_, cT), hseq = jax.lax.scan(step, (h0, c0), inputs_seq)
    return hseq, cT


def _init_params(key, input_sizes, hidden_size):
    """Deterministic synthetic init (PyTorch: Linear(in, H, bias=False) stored
    transposed as (in, H); gate bias ~ randn(H))."""
    all_in = list(input_sizes) + [hidden_size]
    gate_weights, gate_biases = {}, {}
    for gname in GATE_ORDER:
        ws = []
        for d in all_in:
            key, sub = jax.random.split(key)
            bound = 1.0 / jnp.sqrt(d)
            ws.append(jax.random.uniform(sub, (d, hidden_size), jnp.float32,
                                         minval=-bound, maxval=bound))
        key, sub = jax.random.split(key)
        gate_weights[gname] = ws
        gate_biases[gname] = jax.random.normal(sub, (hidden_size,), jnp.float32)
    return gate_weights, gate_biases


if __name__ == "__main__":
    key = jax.random.PRNGKey(0)

    B = 2
    input_sizes = (16, 8)
    H = 32
    T = 8

    gate_weights, gate_biases = _init_params(key, input_sizes, H)

    key, k1, k2, k3, k4, k5, k6 = jax.random.split(key, 7)
    x1 = jax.random.normal(k1, (B, input_sizes[0]), jnp.float32)
    x2 = jax.random.normal(k2, (B, input_sizes[1]), jnp.float32)
    h0 = jax.random.normal(k3, (B, H), jnp.float32)
    c0 = jax.random.normal(k4, (B, H), jnp.float32)

    # --- single step (the module's forward), f32 and bf16 compute paths ---
    ref_h, ref_c = _reference_step(h0, c0, (x1, x2), gate_weights, gate_biases)
    for dtype, tol in ((jnp.float32, 1e-2), (jnp.bfloat16, 5e-2)):
        fused = fuse_step_params(gate_weights, gate_biases, H, compute_dtype=dtype)
        out_h, out_c = lstm_step(h0, c0, (x1, x2), fused)
        jax.block_until_ready((out_h, out_c))
        assert jnp.allclose(out_h, ref_h, atol=tol, rtol=tol), dtype
        assert jnp.allclose(out_c, ref_c, atol=tol, rtol=tol), dtype

    # --- fused sequence kernel (recurrence inside one pallas_call) ---
    x1s = jax.random.normal(k5, (T, B, input_sizes[0]), jnp.float32)
    x2s = jax.random.normal(k6, (T, B, input_sizes[1]), jnp.float32)
    ref_hseq, ref_cT = _reference_seq(h0, c0, (x1s, x2s), gate_weights, gate_biases)
    for dtype, tol in ((jnp.float32, 1e-2), (jnp.bfloat16, 1e-1)):
        fseq = fuse_seq_params(gate_weights, gate_biases, H, compute_dtype=dtype)
        hseq, cT = lstm_sequence(h0, c0, (x1s, x2s), fseq)
        jax.block_until_ready((hseq, cT))
        assert jnp.allclose(hseq, ref_hseq, atol=tol, rtol=tol), dtype
        assert jnp.allclose(cT, ref_cT, atol=tol, rtol=tol), dtype

    print("KERNEL_OK")
</pallas_src>

<mosaic_0001>
module attributes {stable_mosaic.version = 11 : i64} {
  func.func @_lstm_step_kernel(%arg0: i32, %arg1: memref<8x128xf32, #tpu.memory_space<vmem>>, %arg2: memref<128x512xf32, #tpu.memory_space<vmem>>, %arg3: memref<8x128xf32, #tpu.memory_space<vmem>>, %arg4: memref<8x128xf32, #tpu.memory_space<vmem>>, %arg5: memref<8x128xf32, #tpu.memory_space<vmem>>) attributes {dimension_semantics = [#tpu.dimension_semantics<parallel>], iteration_bounds = array<i64: 1>, scalar_prefetch = 0 : i64, scratch_operands = 0 : i64, tpu.core_type = #tpu.core_type<tc>, window_params = [{transform_indices = @transform_0, window_bounds = array<i64: 8, 128>}, {pipeline_mode = #tpu.pipeline_mode<synchronous>, transform_indices = @transform_1, window_bounds = array<i64: 128, 512>}, {transform_indices = @transform_2, window_bounds = array<i64: 8, 128>}, {transform_indices = @transform_3, window_bounds = array<i64: 8, 128>}, {transform_indices = @transform_4, window_bounds = array<i64: 8, 128>}]} {
    %c0 = arith.constant 0 : index
    %c0_0 = arith.constant 0 : index
    %0 = vector.load %arg1[%c0, %c0_0] : memref<8x128xf32, #tpu.memory_space<vmem>>, vector<8x128xf32>
    %c0_1 = arith.constant 0 : index
    %c0_2 = arith.constant 0 : index
    %1 = vector.load %arg2[%c0_1, %c0_2] : memref<128x512xf32, #tpu.memory_space<vmem>>, vector<128x512xf32>
    %cst = arith.constant dense<0.000000e+00> : vector<8x512xf32>
    %2 = tpu.matmul %0, %1, %cst {dimension_numbers = #tpu.dot_dimension_numbers<[1], [0], [0], [1], [0, 0, 1, 1], [], []>} : vector<8x128xf32>, vector<128x512xf32>, vector<8x512xf32> -> vector<8x512xf32>
    %3 = vector.extract_strided_slice %2 {offsets = [0, 0], sizes = [8, 128], strides = [1, 1]} : vector<8x512xf32> to vector<8x128xf32>
    %4 = arith.negf %3 : vector<8x128xf32>
    %5 = math.exp %4 : vector<8x128xf32>
    %cst_3 = arith.constant 1.000000e+00 : f32
    %6 = vector.broadcast %cst_3 : f32 to vector<8x128xf32>
    %7 = arith.addf %6, %5 : vector<8x128xf32>
    %8 = arith.divf %6, %7 : vector<8x128xf32>
    %9 = vector.extract_strided_slice %2 {offsets = [0, 128], sizes = [8, 128], strides = [1, 1]} : vector<8x512xf32> to vector<8x128xf32>
    %10 = arith.negf %9 : vector<8x128xf32>
    %11 = math.exp %10 : vector<8x128xf32>
    %cst_4 = arith.constant 1.000000e+00 : f32
    %12 = vector.broadcast %cst_4 : f32 to vector<8x128xf32>
    %13 = arith.addf %12, %11 : vector<8x128xf32>
    %14 = arith.divf %12, %13 : vector<8x128xf32>
    %15 = vector.extract_strided_slice %2 {offsets = [0, 256], sizes = [8, 128], strides = [1, 1]} : vector<8x512xf32> to vector<8x128xf32>
    %16 = arith.negf %15 : vector<8x128xf32>
    %17 = math.exp %16 : vector<8x128xf32>
    %cst_5 = arith.constant 1.000000e+00 : f32
    %18 = vector.broadcast %cst_5 : f32 to vector<8x128xf32>
    %19 = arith.addf %18, %17 : vector<8x128xf32>
    %20 = arith.divf %18, %19 : vector<8x128xf32>
    %21 = vector.extract_strided_slice %2 {offsets = [0, 384], sizes = [8, 128], strides = [1, 1]} : vector<8x512xf32> to vector<8x128xf32>
    %22 = math.tanh %21 : vector<8x128xf32>
    %c0_6 = arith.constant 0 : index
    %c0_7 = arith.constant 0 : index
    %23 = vector.load %arg3[%c0_6, %c0_7] : memref<8x128xf32, #tpu.memory_space<vmem>>, vector<8x128xf32>
    %24 = arith.mulf %8, %23 : vector<8x128xf32>
    %25 = arith.mulf %14, %22 : vector<8x128xf32>
    %26 = arith.addf %24, %25 : vector<8x128xf32>
    %27 = math.tanh %26 : vector<8x128xf32>
    %28 = arith.mulf %20, %27 : vector<8x128xf32>
    %c0_8 = arith.constant 0 : index
    %c0_9 = arith.constant 0 : index
    %29 = vector.load %arg4[%c0_8, %c0_9] : memref<8x128xf32, #tpu.memory_space<vmem>>, vector<8x128xf32>
    tpu.vector_store %arg4[%c0_8, %c0_9], %28 {strides = array<i32>} : memref<8x128xf32, #tpu.memory_space<vmem>>, vector<8x128xf32>,
    %c0_10 = arith.constant 0 : index
    %c0_11 = arith.constant 0 : index
    %30 = vector.load %arg5[%c0_10, %c0_11] : memref<8x128xf32, #tpu.memory_space<vmem>>, vector<8x128xf32>
    tpu.vector_store %arg5[%c0_10, %c0_11], %26 {strides = array<i32>} : memref<8x128xf32, #tpu.memory_space<vmem>>, vector<8x128xf32>,
    return
  }
  func.func @transform_0(%arg0: i32) -> (i32, i32) {
    %c0_i32 = arith.constant 0 : i32
    %c0_i32_0 = arith.constant 0 : i32
    return %arg0, %c0_i32 : i32, i32
  }
  func.func @transform_1(%arg0: i32) -> (i32, i32) {
    %c0_i32 = arith.constant 0 : i32
    %c0_i32_0 = arith.constant 0 : i32
    %c0_i32_1 = arith.constant 0 : i32
    return %c0_i32, %c0_i32_0 : i32, i32
  }
  func.func @transform_2(%arg0: i32) -> (i32, i32) {
    %c0_i32 = arith.constant 0 : i32
    %c0_i32_0 = arith.constant 0 : i32
    return %arg0, %c0_i32 : i32, i32
  }
  func.func @transform_3(%arg0: i32) -> (i32, i32) {
    %c0_i32 = arith.constant 0 : i32
    %c0_i32_0 = arith.constant 0 : i32
    return %arg0, %c0_i32 : i32, i32
  }
  func.func @transform_4(%arg0: i32) -> (i32, i32) {
    %c0_i32 = arith.constant 0 : i32
    %c0_i32_0 = arith.constant 0 : i32
    return %arg0, %c0_i32 : i32, i32
  }
}

</mosaic_0001>

<bundles_post_ra>
// kernel: tpu_custom_call.1
= control target key start
LH: loop header
LB: loop body
LE: loop exit
PB: predicated region body
PF: predicated region fallthrough
CT: control target
= control target key end

     0   :  { %10 = vsyncpa [#allocation3], 0  ;;  %s507_s0 = inlined_call_operand.hbm [shape: f32[8,128], index: 0, kind: input, shape index: {}]   ;;  %s508_s1 = inlined_call_operand.hbm [shape: f32[128,512], index: 1, kind: input, shape index: {}]   ;;  %s509_s2 = inlined_call_operand.hbm [shape: f32[8,128], index: 2, kind: input, shape index: {}]   ;;  %s510_s3 = inlined_call_operand.hbm [shape: f32[8,128], index: 3, kind: output, shape index: {0}]   ;;  %s511_s4 = inlined_call_operand.hbm [shape: f32[8,128], index: 4, kind: output, shape index: {1}]  }
   0x1   :  { %11 = vsyncpa [#allocation6], 0 }
   0x2   :  { %12 = vsyncpa [#allocation4], 0  ;;  %s29_s17 = sshll.u32 %s508_s1, 4  ;;  %s30_s17 = int_to_ptr.hbm [resolvable:$true] %s29_s17 }
   0x3   :  { %13 = vsyncpa [#allocation10], 0  ;;  %s460_s18 = smov [#allocation5]   ;;  %s19_s22 = sshll.u32 %s507_s0, 4  ;;  %s20_s22 = int_to_ptr.hbm [resolvable:$true] %s19_s22 }
   0x4   :  { %s31_s19 = sshll.u32 %s460_s18, 4  ;;  %s461_s23 = smov 512   ;;  %s32_s19 = int_to_ptr.vmem [resolvable:$true] %s31_s19 }
   0x5   :  { %s462_s24 = smov 32   ;;  %s463_s25 = smov [#allocation2]  }
   0x6   :  { %37 = dma.hbm_to_vmem [thread:$0]  %s30_s17, 8192, %s32_s19, [#allocation6], %s461_s23, %s461_s23, %s462_s24  }
   0x7   :  { %s21_s26 = sshll.u32 %s463_s25, 4  ;;  %s43_s29 = sshll.u32 %s509_s2, 4  ;;  %s22_s26 = int_to_ptr.vmem [resolvable:$true] %s21_s26  ;;  %s44_s29 = int_to_ptr.hbm [resolvable:$true] %s43_s29 }
   0x8   :  { %24 = dma.hbm_to_vmem [thread:$0]  %s20_s22, 128, %s22_s26, [#allocation3]  }
   0x9   :  { %s464_s1 = smov [#allocation7]  }
   0xa   :  { %s45_s30 = sshll.u32 %s464_s1, 4  ;;  %s46_s30 = int_to_ptr.vmem [resolvable:$true] %s45_s30 }
   0xb   :  { %48 = dma.hbm_to_vmem [thread:$0]  %s44_s29, 128, %s46_s30, [#allocation6]  }
   0xc   :  { %452 = dma.done.wait [#allocation3], 128  }
   0xd   :  { %453 = vsyncadd [#allocation3], 4294967168 }
   0xe   :  { %454 = dma.done.wait [#allocation6], 8320  }
   0xf   :  { %455 = vsyncadd [#allocation6], 4294958976  ;;  %v122_v0 = vld [vmem:[#allocation5 + $0x1e0] sm:$0xff]  ;;  %v123_v1 = vld [vmem:[#allocation5 + $0x1e8] sm:$0xff]  ;;  %s465_s0 = smov [#allocation9]   ;;  %s290_s7 = sshll.u32 %s511_s4, 4  ;;  %s291_s7 = int_to_ptr.hbm [resolvable:$true] %s290_s7 }
  0x10   :  { %v124_v2 = vld [vmem:[#allocation5 + $0x1f0] sm:$0xff]  ;;  %126 = vmatpush.msra.mxu0 %v122_v0  ;;  %146 = vmatpush.msra.mxu1 %v123_v1  ;;  %v118_v3 = vld [vmem:[#allocation5 + $0x1c0] sm:$0xff]  ;;  %v119_v4 = vld [vmem:[#allocation5 + $0x1c8] sm:$0xff]  ;;  %s288_s2 = sshll.u32 %s465_s0, 4  ;;  %s466_s8 = smov [#allocation8]   ;;  %s289_s2 = int_to_ptr.vmem [resolvable:$true] %s288_s2 }
  0x11   :  { %v120_v5 = vld [vmem:[#allocation5 + $0x1d0] sm:$0xff]  ;;  %166 = vmatpush.msra.mxu2 %v124_v2  ;;  %v114_v6 = vld [vmem:[#allocation5 + $0x1a0] sm:$0xff]  ;;  %v115_v7 = vld [vmem:[#allocation5 + $0x1a8] sm:$0xff]  ;;  %s277_s9 = sshll.u32 %s466_s8, 4  ;;  %s279_s11 = sshll.u32 %s510_s3, 4  ;;  %s278_s9 = int_to_ptr.vmem [resolvable:$true] %s277_s9  ;;  %s280_s11 = int_to_ptr.hbm [resolvable:$true] %s279_s11 }
  0x12   :  { %127 = vmatpush.msra.mxu0 %v118_v3  ;;  %147 = vmatpush.msra.mxu1 %v119_v4  ;;  %v116_v8 = vld [vmem:[#allocation5 + $0x1b0] sm:$0xff]  ;;  %v110_v9 = vld [vmem:[#allocation5 + $0x180] sm:$0xff]  ;;  %v111_v10 = vld [vmem:[#allocation5 + $0x188] sm:$0xff] }
  0x13   :  { %167 = vmatpush.msra.mxu2 %v120_v5  ;;  %v112_v11 = vld [vmem:[#allocation5 + $0x190] sm:$0xff]  ;;  %v106_v12 = vld [vmem:[#allocation5 + $0x160] sm:$0xff]  ;;  %v107_v13 = vld [vmem:[#allocation5 + $0x168] sm:$0xff] }
  0x14   :  { %128 = vmatpush.msra.mxu0 %v114_v6  ;;  %148 = vmatpush.msra.mxu1 %v115_v7  ;;  %v108_v14 = vld [vmem:[#allocation5 + $0x170] sm:$0xff]  ;;  %v102_v15 = vld [vmem:[#allocation5 + $0x140] sm:$0xff]  ;;  %v103_v16 = vld [vmem:[#allocation5 + $0x148] sm:$0xff] }
  0x15   :  { %168 = vmatpush.msra.mxu2 %v116_v8  ;;  %v125_v17 = vld [vmem:[#allocation5 + $0x1f8] sm:$0xff]  ;;  %v104_v18 = vld [vmem:[#allocation5 + $0x150] sm:$0xff]  ;;  %v98_v20 = vld [vmem:[#allocation5 + $0x120] sm:$0xff] }
  0x16   :  { %129 = vmatpush.msra.mxu0 %v110_v9  ;;  %149 = vmatpush.msra.mxu1 %v111_v10  ;;  %v121_v19 = vld [vmem:[#allocation5 + $0x1d8] sm:$0xff]  ;;  %v99_v21 = vld [vmem:[#allocation5 + $0x128] sm:$0xff]  ;;  %v100_v22 = vld [vmem:[#allocation5 + $0x130] sm:$0xff] }
  0x17   :  { %169 = vmatpush.msra.mxu2 %v112_v11  ;;  %186 = vmatpush.msra.mxu3 %v125_v17  ;;  %v117_v23 = vld [vmem:[#allocation5 + $0x1b8] sm:$0xff]  ;;  %v94_v24 = vld [vmem:[#allocation5 + $0x100] sm:$0xff]  ;;  %v95_v25 = vld [vmem:[#allocation5 + $0x108] sm:$0xff] }
  0x18   :  { %130 = vmatpush.msra.mxu0 %v106_v12  ;;  %150 = vmatpush.msra.mxu1 %v107_v13  ;;  %v96_v26 = vld [vmem:[#allocation5 + $0x110] sm:$0xff]  ;;  %v113_v27 = vld [vmem:[#allocation5 + $0x198] sm:$0xff]  ;;  %v90_v28 = vld [vmem:[#allocation5 + $0xe0] sm:$0xff] }
  0x19   :  { %170 = vmatpush.msra.mxu2 %v108_v14  ;;  %187 = vmatpush.msra.mxu3 %v121_v19  ;;  %v91_v29 = vld [vmem:[#allocation5 + $0xe8] sm:$0xff]  ;;  %v92_v30 = vld [vmem:[#allocation5 + $0xf0] sm:$0xff]  ;;  %v109_v31 = vld [vmem:[#allocation5 + $0x178] sm:$0xff] }
  0x1a   :  { %131 = vmatpush.msra.mxu0 %v102_v15  ;;  %151 = vmatpush.msra.mxu1 %v103_v16  ;;  %v86_v32 = vld [vmem:[#allocation5 + $0xc0] sm:$0xff]  ;;  %v87_v33 = vld [vmem:[#allocation5 + $0xc8] sm:$0xff]  ;;  %v88_v34 = vld [vmem:[#allocation5 + $0xd0] sm:$0xff] }
  0x1b   :  { %171 = vmatpush.msra.mxu2 %v104_v18  ;;  %188 = vmatpush.msra.mxu3 %v117_v23  ;;  %v105_v35 = vld [vmem:[#allocation5 + $0x158] sm:$0xff]  ;;  %v82_v36 = vld [vmem:[#allocation5 + $0xa0] sm:$0xff]  ;;  %v83_v37 = vld [vmem:[#allocation5 + $0xa8] sm:$0xff] }
  0x1c   :  { %132 = vmatpush.msra.mxu0 %v98_v20  ;;  %152 = vmatpush.msra.mxu1 %v99_v21  ;;  %v84_v38 = vld [vmem:[#allocation5 + $0xb0] sm:$0xff]  ;;  %v101_v39 = vld [vmem:[#allocation5 + $0x138] sm:$0xff]  ;;  %v78_v40 = vld [vmem:[#allocation5 + $0x80] sm:$0xff] }
  0x1d   :  { %172 = vmatpush.msra.mxu2 %v100_v22  ;;  %189 = vmatpush.msra.mxu3 %v113_v27  ;;  %v79_v41 = vld [vmem:[#allocation5 + $0x88] sm:$0xff]  ;;  %v80_v42 = vld [vmem:[#allocation5 + $0x90] sm:$0xff]  ;;  %v97_v43 = vld [vmem:[#allocation5 + $0x118] sm:$0xff] }
  0x1e   :  { %133 = vmatpush.msra.mxu0 %v94_v24  ;;  %153 = vmatpush.msra.mxu1 %v95_v25  ;;  %v74_v44 = vld [vmem:[#allocation5 + $0x60] sm:$0xff]  ;;  %v75_v45 = vld [vmem:[#allocation5 + $0x68] sm:$0xff]  ;;  %v76_v46 = vld [vmem:[#allocation5 + $0x70] sm:$0xff] }
  0x1f   :  { %173 = vmatpush.msra.mxu2 %v96_v26  ;;  %190 = vmatpush.msra.mxu3 %v109_v31  ;;  %v93_v47 = vld [vmem:[#allocation5 + $0xf8] sm:$0xff]  ;;  %v70_v48 = vld [vmem:[#allocation5 + $0x40] sm:$0xff]  ;;  %v71_v49 = vld [vmem:[#allocation5 + $0x48] sm:$0xff] }
  0x20   :  { %134 = vmatpush.msra.mxu0 %v90_v28  ;;  %154 = vmatpush.msra.mxu1 %v91_v29  ;;  %v72_v50 = vld [vmem:[#allocation5 + $0x50] sm:$0xff]  ;;  %v89_v51 = vld [vmem:[#allocation5 + $0xd8] sm:$0xff]  ;;  %v66_v52 = vld [vmem:[#allocation5 + $0x20] sm:$0xff] }
  0x21   :  { %174 = vmatpush.msra.mxu2 %v92_v30  ;;  %191 = vmatpush.msra.mxu3 %v105_v35  ;;  %v67_v53 = vld [vmem:[#allocation5 + $0x28] sm:$0xff]  ;;  %v68_v54 = vld [vmem:[#allocation5 + $0x30] sm:$0xff]  ;;  %v85_v55 = vld [vmem:[#allocation5 + $0xb8] sm:$0xff] }
  0x22   :  { %135 = vmatpush.msra.mxu0 %v86_v32  ;;  %155 = vmatpush.msra.mxu1 %v87_v33  ;;  %v62_v56 = vld [vmem:[#allocation5] sm:$0xff]  ;;  %v63_v57 = vld [vmem:[#allocation5 + $0x8] sm:$0xff]  ;;  %v64_v58 = vld [vmem:[#allocation5 + $0x10] sm:$0xff] }
  0x23   :  { %175 = vmatpush.msra.mxu2 %v88_v34  ;;  %192 = vmatpush.msra.mxu3 %v101_v39  ;;  %v61_v59 = vld [vmem:[#allocation2] sm:$0xff]  ;;  %v264_v31 = vld [vmem:[#allocation7] sm:$0xff] }
  0x24   :  { %136 = vmatpush.msra.mxu0 %v82_v36  ;;  %156 = vmatpush.msra.mxu1 %v83_v37  ;;  %v81_v60 = vld [vmem:[#allocation5 + $0x98] sm:$0xff] }
  0x25   :  { %176 = vmatpush.msra.mxu2 %v84_v38  ;;  %193 = vmatpush.msra.mxu3 %v97_v43  ;;  %v77_v61 = vld [vmem:[#allocation5 + $0x78] sm:$0xff] }
  0x26   :  { %137 = vmatpush.msra.mxu0 %v78_v40  ;;  %157 = vmatpush.msra.mxu1 %v79_v41  ;;  %v73_v62 = vld [vmem:[#allocation5 + $0x58] sm:$0xff] }
  0x27   :  { %177 = vmatpush.msra.mxu2 %v80_v42  ;;  %194 = vmatpush.msra.mxu3 %v93_v47  ;;  %v69_v63 = vld [vmem:[#allocation5 + $0x38] sm:$0xff] }
  0x28   :  { %138 = vmatpush.msra.mxu0 %v74_v44  ;;  %158 = vmatpush.msra.mxu1 %v75_v45  ;;  %v65_v0 = vld [vmem:[#allocation5 + $0x18] sm:$0xff] }
  0x29   :  { %178 = vmatpush.msra.mxu2 %v76_v46  ;;  %195 = vmatpush.msra.mxu3 %v89_v51 }
  0x2a   :  { %139 = vmatpush.msra.mxu0 %v70_v48  ;;  %159 = vmatpush.msra.mxu1 %v71_v49 }
  0x2b   :  { %179 = vmatpush.msra.mxu2 %v72_v50  ;;  %196 = vmatpush.msra.mxu3 %v85_v55 }
  0x2c   :  { %140 = vmatpush.msra.mxu0 %v66_v52  ;;  %160 = vmatpush.msra.mxu1 %v67_v53 }
  0x2d   :  { %180 = vmatpush.msra.mxu2 %v68_v54  ;;  %197 = vmatpush.msra.mxu3 %v81_v60 }
  0x2e   :  { %141 = vmatpush.msra.mxu0 %v62_v56  ;;  %161 = vmatpush.msra.mxu1 %v63_v57 }
  0x2f   :  { %181 = vmatpush.msra.mxu2 %v64_v58  ;;  %142 = vmatmul.f32.vlgmr.msra.gmra.mxu0 %v61_v59 }
  0x30   :  { %162 = vmatmul.f32.vlgmr.msra.gmra.mxu1 %v61_v59  ;;  %182 = vmatmul.f32.vlgmr.msra.gmra.mxu2 %v61_v59 }
  0x31   :  { %198 = vmatpush.msra.mxu3 %v77_v61 }
  0x33   :  { %199 = vmatpush.msra.mxu3 %v73_v62 }
  0x35   :  { %200 = vmatpush.msra.mxu3 %v69_v63 }
  0x37   :  { %201 = vmatpush.msra.mxu3 %v65_v0 }
  0x38   :  { %202 = vmatmul.f32.vlgmr.msra.gmra.mxu3 %v61_v59 }
  0xac   :  { %v143_v1 = vpop.f32.mrf.mxu0 }
  0xad   :  { %v306_v2 = vmul.f32 -1.442695, %v143_v1  ;;  %v163_v3 = vpop.f32.mrf.mxu1 }
  0xae   :  { %v307_v4 = vmul.f32 -1.442695, %v163_v3 }
  0xaf   :  { %316 = vpow2.f32 %v306_v2 }
  0xb0   :  { %318 = vpow2.f32 %v307_v4 }
  0xb3   :  { %v183_v5 = vpop.f32.mrf.mxu2 }
  0xb4   :  { %v308_v6 = vmul.f32 -1.442695, %v183_v5 }
  0xb5   :  { %v317_v7 = vpop.eup %316 }
  0xb6   :  { %v319_v8 = vpop.eup %318  ;;  %v209_v9 = vadd.f32 1.0, %v317_v7  ;;  %320 = vpow2.f32 %v308_v6 }
  0xb7   :  { %v228_v10 = vadd.f32 1.0, %v319_v8 }
  0xb8   :  { %322 = vrcp.f32 %v209_v9  ;;  %v221_v19 = vand.u32 2147483648, %v209_v9  ;;  %v219_v22 = vand.u32 2147483647, %v209_v9  ;;  %vm215_vm2 = vweird.f32 %v209_v9 }
  0xb9   :  { %324 = vrcp.f32 %v228_v10  ;;  %v240_v23 = vand.u32 2147483648, %v228_v10  ;;  %v238_v25 = vand.u32 2147483647, %v228_v10  ;;  %vm234_vm4 = vweird.f32 %v228_v10 }
  0xba   :  { %v222_v28 = vor.u32 1.1754944e-38, %v221_v19  ;;  %vm220_vm5 = vcmp.eq.f32.partialorder %v219_v22, 8.507059e+37 }
  0xbb   :  { %v203_v14 = vpop.f32.mrf.mxu3  ;;  %v241_v34 = vor.u32 1.1754944e-38, %v240_v23  ;;  %vm239_vm7 = vcmp.eq.f32.partialorder %v238_v25, 8.507059e+37 }
  0xbc   :  { %v321_v11 = vpop.eup %320 }
  0xbd   :  { %v247_v12 = vadd.f32 1.0, %v321_v11 }
  0xbe   :  { %v323_v13 = vpop.eup %322 }
  0xbf   :  { %v325_v15 = vpop.eup %324  ;;  %v211_v16 = vmul.f32 %v323_v13, %v209_v9  ;;  %326 = vrcp.f32 %v247_v12  ;;  %vm216_vm0 = vweird.f32 %v323_v13  ;;  %v259_v44 = vand.u32 2147483648, %v247_v12 }
  0xc0   :  { %v230_v17 = vmul.f32 %v325_v15, %v228_v10  ;;  %328 = vtanh.f32 %v203_v14  ;;  %vm235_vm1 = vweird.f32 %v325_v15  ;;  %vm217_vm3 = vmor %vm215_vm2, %vm216_vm0  ;;  %vm253_vm9 = vweird.f32 %v247_v12 }
  0xc1   :  { %v212_v18 = vsub.f32 1.0, %v211_v16  ;;  %vm236_vm6 = vmor %vm234_vm4, %vm235_vm1  ;;  %v257_v45 = vand.u32 2147483647, %v247_v12  ;;  %v260_v47 = vor.u32 1.1754944e-38, %v259_v44 }
  0xc2   :  { %v231_v20 = vsub.f32 1.0, %v230_v17 }
  0xc3   :  { %v213_v21 = vmul.f32 %v323_v13, %v212_v18  ;;  %vm258_vm11 = vcmp.eq.f32.partialorder %v257_v45, 8.507059e+37 }
  0xc4   :  { %v232_v24 = vmul.f32 %v325_v15, %v231_v20 }
  0xc5   :  { %v327_v26 = vpop.eup %326  ;;  %v214_v27 = vadd.f32 %v323_v13, %v213_v21 }
  0xc6   :  { %v249_v29 = vmul.f32 %v327_v26, %v247_v12  ;;  %v233_v30 = vadd.f32 %v325_v15, %v232_v24  ;;  %v329_v32 = vpop.eup %328  ;;  %vm254_vm8 = vweird.f32 %v327_v26 }
  0xc7   :  { %v218_v33 = vsel %vm217_vm3, %v323_v13, %v214_v27  ;;  %vm255_vm10 = vmor %vm253_vm9, %vm254_vm8 }
  0xc8   :  { %v250_v35 = vsub.f32 1.0, %v249_v29  ;;  %v223_v36 = vsel %vm220_vm5, %v222_v28, %v218_v33  ;;  %v237_v37 = vsel %vm236_vm6, %v325_v15, %v233_v30 }
  0xc9   :  { %v242_v38 = vsel %vm239_vm7, %v241_v34, %v237_v37  ;;  %v265_v39 = vmul.f32 %v264_v31, %v223_v36 }
  0xca   :  { %v266_v40 = vmul.f32 %v329_v32, %v242_v38  ;;  %v251_v41 = vmul.f32 %v327_v26, %v250_v35 }
  0xcc   :  { %v267_v42 = vadd.f32 %v266_v40, %v265_v39  ;;  %v252_v43 = vadd.f32 %v327_v26, %v251_v41 }
  0xce   :  { %330 = vtanh.f32 %v267_v42  ;;  %271 = vst [vmem:[#allocation9] sm:$0xff] %v267_v42  ;;  %v256_v46 = vsel %vm255_vm10, %v327_v26, %v252_v43 }
  0xcf   :  { %293 = dma.vmem_to_hbm [thread:$0]  %s289_s2, 128, %s291_s7, [#allocation10]   ;;  %v261_v49 = vsel %vm258_vm11, %v260_v47, %v256_v46 }
  0xd4   :  { %v331_v48 = vpop.eup %330 }
  0xd5   :  { %v269_v50 = vmul.f32 %v331_v48, %v261_v49 }
  0xd7   :  { %270 = vst [vmem:[#allocation8] sm:$0xff] %v269_v50 }
  0xd8   :  { %282 = dma.vmem_to_hbm [thread:$0]  %s278_s9, 128, %s280_s11, [#allocation4]  }
  0xd9   :  { %456 = dma.done.wait [#allocation4], 128  }
  0xda   :  { %457 = vsyncadd [#allocation4], 4294967168 }
  0xdb   :  { %458 = dma.done.wait [#allocation10], 128  }
  0xdc   :  { %459 = vsyncadd [#allocation10], 4294967168 }
  0xdd   :  { %302 = vsyncpa [#allocation3], 1 }
  0xde   :  { %303 = vsyncpa [#allocation6], 1 }
  0xdf   :  { %304 = vsyncpa [#allocation4], 1 }
  0xe0   :  { %305 = vsyncpa [#allocation10], 1 }

</bundles_post_ra>
